<compile_context>
chip_gen: v7x
topology: tpu7x:2x2x1
jax: 0.10.0
libtpu: 0.0.40
codegen_flags: <defaults>
</compile_context>

<pallas_src>
import functools

import jax
import jax.numpy as jnp
from jax.experimental import pallas as pl
from jax.experimental.pallas import tpu as pltpu

NEG_SLOPE = 0.2  # DGL GATConv default negative_slope


def _rup(n, m=8):
    return ((n + m - 1) // m) * m


def pack_gat_params(W, attn_l, attn_r, bias):
    """One-time packing of all parameter-derived constants into a single slab.

    Slab layout (lane width LW = H*O + 2*H, row sections padded to multiples of 8):
      rows [0, F_in)   lanes [0, LW) : Wcat = [W | W @ bd_l | W @ bd_r]
      rows [oE, oE+H)  lanes [0, HO) : expand (row h = ones on head-h's O-wide slice)
      row  [oB]        lanes [0, HO) : bias (flat DGL h*O+o order)
    """
    F_in, HO = W.shape
    H, O = attn_l.shape
    assert HO == H * O
    LW = HO + 2 * H

    eye_h = jnp.eye(H, dtype=jnp.float32)
    # Block-diagonal per-head attention vectors: bd[h*O + o, h'] = attn[h, o] * (h == h').
    bd_l = (attn_l[:, :, None] * eye_h[:, None, :]).reshape(HO, H)
    bd_r = (attn_r[:, :, None] * eye_h[:, None, :]).reshape(HO, H)
    # Fold the logit projections into the fc weight: one matmul yields feat, el, er.
    wcat = jnp.concatenate([W, W @ bd_l, W @ bd_r], axis=1)        # (F_in, HO + 2H)
    expand = jnp.repeat(eye_h, O, axis=1)                          # (H, HO)

    oE = _rup(F_in)
    oB = oE + _rup(H)
    rows = oB + 8
    slab = jnp.zeros((rows, LW), jnp.float32)
    slab = slab.at[0:F_in, :].set(wcat)
    slab = slab.at[oE:oE + H, 0:HO].set(expand)
    slab = slab.at[oB, 0:HO].set(bias)
    return slab


@functools.partial(jax.jit, static_argnames=("H", "O"))
def gat_user_embedding_pallas(x, adj, slab, *, H, O):
    """GAT output row for node 0 (DGL flat h*O+o order), shape (H*O,)."""
    N, F_in = x.shape
    HO = H * O
    oE = _rup(F_in)
    oB = oE + _rup(H)
    adj0 = adj[0, :].reshape(N, 1)        # incoming edges of the user node (dst = 0)

    def kernel(x_ref, slab_ref, adj0_ref, out_ref):
        x_v = x_ref[...]                                               # (N, F_in)
        wcat = slab_ref[0:F_in, :]                                     # (F_in, HO + 2H)

        # Fused projection + per-head attention logits in a single MXU call.
        fel = jnp.dot(x_v, wcat, preferred_element_type=jnp.float32)   # (N, HO + 2H)
        feat = fel[:, 0:HO]                                            # (N, HO)
        el = fel[:, HO:HO + H]                                         # (N, H)  src logits
        er0 = fel[0:1, HO + H:HO + 2 * H]                              # (1, H)  dst-0 logit

        # e[j, h] = LeakyReLU(el[j, h] + er0[h]); mask non-edges of dst 0.
        e = el + er0                                                   # (N, H)
        e = jnp.where(e > 0, e, NEG_SLOPE * e)
        mask = adj0_ref[...] > 0.5                                     # (N, 1)
        e = jnp.where(mask, e, -1e30)

        # Softmax over incoming edges (axis 0 = source nodes), per head.
        # Exact division; guarded denominator so a zero-in-degree dst can't give inf/NaN.
        m = jnp.max(e, axis=0, keepdims=True)                          # (1, H)
        p = jnp.where(mask, jnp.exp(e - m), 0.0)                       # (N, H)
        denom = jnp.maximum(jnp.sum(p, axis=0, keepdims=True), 1e-30)  # (1, H)
        alpha = p / denom                                              # (N, H)

        # Broadcast each head's weight over its O features and aggregate:
        #   user[h*O + o] = sum_j alpha[j, h] * feat[j, h*O + o]
        expand = slab_ref[oE:oE + H, 0:HO]                             # (H, HO)
        alpha_full = jnp.dot(alpha, expand,
                             preferred_element_type=jnp.float32)       # (N, HO)
        user = jnp.sum(alpha_full * feat, axis=0, keepdims=True)       # (1, HO)

        bias = slab_ref[oB:oB + 1, 0:HO]                               # (1, HO)
        out_ref[...] = (user + bias).astype(out_ref.dtype)

    # No grid: single invocation, whole (tiny) arrays resident in VMEM.
    # TODO(synk): for large N, tile x over a grid axis ("arbitrary") with an online-softmax
    # accumulator and/or raise vmem_limit_bytes; unnecessary at these shapes.
    out = pl.pallas_call(
        kernel,
        out_shape=jax.ShapeDtypeStruct((1, HO), jnp.float32),
        in_specs=[pl.BlockSpec(memory_space=pltpu.MemorySpace.VMEM)] * 3,
        out_specs=pl.BlockSpec(memory_space=pltpu.MemorySpace.VMEM),
    )(x, slab, adj0)
    return out[0]                                                      # (H*O,)


def model_forward(adj, features_in, packed_slab, H, O, item_index=None):
    """Equivalent of model.forward(graph, features_in, item_index): the user embedding."""
    # forward() only consumes features[0, :], so attention is computed for dst node 0 only.
    return gat_user_embedding_pallas(features_in, adj, packed_slab, H=H, O=O)


def gat_reference(adj, x, params):
    """Pure-JAX reference (mirrors DGL GATConv math); returns row 0 in DGL flat order."""
    W, attn_l, attn_r, bias = params
    N = x.shape[0]
    H, O = attn_l.shape
    feat = (x @ W).reshape(N, H, O)
    el = jnp.sum(feat * attn_l[None], axis=-1)            # (N, H)
    er = jnp.sum(feat * attn_r[None], axis=-1)            # (N, H)
    e = er.T[:, :, None] + el.T[:, None, :]               # (H, N_dst, N_src)
    e = jnp.where(e > 0, e, NEG_SLOPE * e)
    mask = adj[None] > 0.5
    e = jnp.where(mask, e, -jnp.inf)
    alpha = jax.nn.softmax(e, axis=-1)
    rst = jnp.einsum('hij,jho->iho', alpha, feat) + bias.reshape(1, H, O)
    return rst.reshape(N, H * O)[0, :]


if __name__ == "__main__":
    embed_size, head_num = 8, 4        # out_feats=8 per head, in_feats=32
    N = 8                              # number of graph nodes
    F_in = embed_size * head_num
    O, H = embed_size, head_num

    key = jax.random.PRNGKey(0)
    k_x, k_w, k_al, k_ar, k_b, k_g = jax.random.split(key, 6)

    # Deterministic synthetic parameters (shapes per DGL GATConv(in=H*O, out=O, heads=H)).
    W = 0.1 * jax.random.normal(k_w, (F_in, H * O), jnp.float32)   # fc weight (no bias)
    attn_l = 0.1 * jax.random.normal(k_al, (H, O), jnp.float32)
    attn_r = 0.1 * jax.random.normal(k_ar, (H, O), jnp.float32)
    bias = 0.1 * jax.random.normal(k_b, (H * O,), jnp.float32)
    params = (W, attn_l, attn_r, bias)

    # Pack all parameter-derived constants ONCE (hoisted out of the per-call path).
    slab = jax.block_until_ready(pack_gat_params(W, attn_l, attn_r, bias))

    # Node features and a random graph (dense adjacency adj[dst, src], self-loops).
    features_in = jax.random.normal(k_x, (N, F_in), jnp.float32)
    adj = (jax.random.uniform(k_g, (N, N)) < 0.5).astype(jnp.float32)
    adj = jnp.maximum(adj, jnp.eye(N, dtype=jnp.float32))

    item_index = None  # unused by forward(), kept for signature parity

    user_embedding = model_forward(adj, features_in, slab, H, O, item_index)
    user_embedding = jax.block_until_ready(user_embedding)

    ref = gat_reference(adj, features_in, params)
    assert user_embedding.shape == (H * O,)
    err = jnp.max(jnp.abs(user_embedding - ref))
    assert jnp.allclose(user_embedding, ref, atol=1e-3, rtol=1e-3), err

    print("KERNEL_OK")
</pallas_src>

<mosaic_0001>
module attributes {stable_mosaic.version = 11 : i64} {
  func.func @kernel(%arg0: memref<8x32xf32, #tpu.memory_space<vmem>>, %arg1: memref<48x40xf32, #tpu.memory_space<vmem>>, %arg2: memref<8x1xf32, #tpu.memory_space<vmem>>, %arg3: memref<1x32xf32, #tpu.memory_space<vmem>>) attributes {dimension_semantics = [], scalar_prefetch = 0 : i64, scratch_operands = 0 : i64, tpu.core_type = #tpu.core_type<tc>} {
    %c0 = arith.constant 0 : index
    %c0_0 = arith.constant 0 : index
    %0 = vector.load %arg0[%c0, %c0_0] : memref<8x32xf32, #tpu.memory_space<vmem>>, vector<8x32xf32>
    %c0_1 = arith.constant 0 : index
    %c0_2 = arith.constant 0 : index
    %1 = vector.load %arg1[%c0_1, %c0_2] : memref<48x40xf32, #tpu.memory_space<vmem>>, vector<32x40xf32>
    %cst = arith.constant dense<0.000000e+00> : vector<8x40xf32>
    %2 = tpu.matmul %0, %1, %cst {dimension_numbers = #tpu.dot_dimension_numbers<[1], [0], [0], [1], [0, 0, 1, 1], [], []>} : vector<8x32xf32>, vector<32x40xf32>, vector<8x40xf32> -> vector<8x40xf32>
    %3 = vector.extract_strided_slice %2 {offsets = [0, 0], sizes = [8, 32], strides = [1, 1]} : vector<8x40xf32> to vector<8x32xf32>
    %4 = vector.extract_strided_slice %2 {offsets = [0, 32], sizes = [8, 4], strides = [1, 1]} : vector<8x40xf32> to vector<8x4xf32>
    %5 = vector.extract_strided_slice %2 {offsets = [0, 36], sizes = [1, 4], strides = [1, 1]} : vector<8x40xf32> to vector<1x4xf32>
    %6 = vector.broadcast %5 : vector<1x4xf32> to vector<8x4xf32>
    %7 = arith.addf %4, %6 : vector<8x4xf32>
    %cst_3 = arith.constant 0.000000e+00 : f32
    %8 = vector.broadcast %cst_3 : f32 to vector<8x4xf32>
    %9 = arith.cmpf ogt, %7, %8 : vector<8x4xf32>
    %cst_4 = arith.constant 2.000000e-01 : f32
    %10 = vector.broadcast %cst_4 : f32 to vector<8x4xf32>
    %11 = arith.mulf %10, %7 : vector<8x4xf32>
    %12 = arith.select %9, %7, %11 : vector<8x4xi1>, vector<8x4xf32>
    %c0_5 = arith.constant 0 : index
    %c0_6 = arith.constant 0 : index
    %13 = vector.load %arg2[%c0_5, %c0_6] : memref<8x1xf32, #tpu.memory_space<vmem>>, vector<8x1xf32>
    %cst_7 = arith.constant 5.000000e-01 : f32
    %14 = vector.broadcast %cst_7 : f32 to vector<8x1xf32>
    %15 = arith.cmpf ogt, %13, %14 : vector<8x1xf32>
    %cst_8 = arith.constant -1.000000e+30 : f32
    %16 = vector.shape_cast %15 : vector<8x1xi1> to vector<8x1xi1>
    %17 = vector.broadcast %16 : vector<8x1xi1> to vector<8x4xi1>
    %18 = vector.broadcast %cst_8 : f32 to vector<8x4xf32>
    %19 = arith.select %17, %12, %18 : vector<8x4xi1>, vector<8x4xf32>
    %cst_9 = arith.constant dense<0xFF800000> : vector<4xf32>
    %20 = vector.multi_reduction <maximumf>, %19, %cst_9 [0] : vector<8x4xf32> to vector<4xf32>
    %21 = vector.shape_cast %20 : vector<4xf32> to vector<1x4xf32>
    %22 = vector.broadcast %21 : vector<1x4xf32> to vector<8x4xf32>
    %23 = arith.subf %19, %22 : vector<8x4xf32>
    %24 = math.exp %23 : vector<8x4xf32>
    %cst_10 = arith.constant 0.000000e+00 : f32
    %25 = vector.shape_cast %15 : vector<8x1xi1> to vector<8x1xi1>
    %26 = vector.broadcast %25 : vector<8x1xi1> to vector<8x4xi1>
    %27 = vector.broadcast %cst_10 : f32 to vector<8x4xf32>
    %28 = arith.select %26, %24, %27 : vector<8x4xi1>, vector<8x4xf32>
    %cst_11 = arith.constant dense<0.000000e+00> : vector<4xf32>
    %29 = vector.multi_reduction <add>, %28, %cst_11 [0] : vector<8x4xf32> to vector<4xf32>
    %30 = vector.shape_cast %29 : vector<4xf32> to vector<1x4xf32>
    %cst_12 = arith.constant 1.000000e-30 : f32
    %31 = vector.broadcast %cst_12 : f32 to vector<1x4xf32>
    %32 = arith.maximumf %30, %31 : vector<1x4xf32>
    %33 = vector.broadcast %32 : vector<1x4xf32> to vector<8x4xf32>
    %34 = arith.divf %28, %33 : vector<8x4xf32>
    %c32 = arith.constant 32 : index
    %c0_13 = arith.constant 0 : index
    %35 = vector.load %arg1[%c32, %c0_13] : memref<48x40xf32, #tpu.memory_space<vmem>>, vector<4x32xf32>
    %cst_14 = arith.constant dense<0.000000e+00> : vector<8x32xf32>
    %36 = tpu.matmul %34, %35, %cst_14 {dimension_numbers = #tpu.dot_dimension_numbers<[1], [0], [0], [1], [0, 0, 1, 1], [], []>} : vector<8x4xf32>, vector<4x32xf32>, vector<8x32xf32> -> vector<8x32xf32>
    %37 = arith.mulf %36, %3 : vector<8x32xf32>
    %cst_15 = arith.constant dense<0.000000e+00> : vector<32xf32>
    %38 = vector.multi_reduction <add>, %37, %cst_15 [0] : vector<8x32xf32> to vector<32xf32>
    %39 = vector.shape_cast %38 : vector<32xf32> to vector<1x32xf32>
    %c40 = arith.constant 40 : index
    %c0_16 = arith.constant 0 : index
    %40 = vector.load %arg1[%c40, %c0_16] : memref<48x40xf32, #tpu.memory_space<vmem>>, vector<1x32xf32>
    %41 = arith.addf %39, %40 : vector<1x32xf32>
    %c0_17 = arith.constant 0 : index
    %c0_18 = arith.constant 0 : index
    %42 = vector.load %arg3[%c0_17, %c0_18] : memref<1x32xf32, #tpu.memory_space<vmem>>, vector<1x32xf32>
    tpu.vector_store %arg3[%c0_17, %c0_18], %41 {strides = array<i32>} : memref<1x32xf32, #tpu.memory_space<vmem>>, vector<1x32xf32>,
    return
  }
}

</mosaic_0001>

<bundles_post_ra>
// kernel: gat_user_embedding_pallas.1
= control target key start
LH: loop header
LB: loop body
LE: loop exit
PB: predicated region body
PF: predicated region fallthrough
CT: control target
= control target key end

     0   :  { %v311_v3 = vmov 0.0|0.0   ;;  %vm312_vm0 = vmmov 0   ;;  %v313_v6 = vmov 0.0   ;;  %v314_v8 = vmov 0   ;;  %s378_s0 = inlined_call_operand.vmem [shape: f32[8,32], index: 0, kind: input, shape index: {}]   ;;  %s379_s1 = inlined_call_operand.vmem [shape: f32[48,40], index: 1, kind: input, shape index: {}]   ;;  %s380_s2 = inlined_call_operand.vmem [shape: f32[8,1], index: 2, kind: input, shape index: {}]   ;;  %s381_s3 = inlined_call_operand.hbm [shape: f32[1,32], index: 3, kind: output, shape index: {}]  }
   0x1   :  { %v16_v0 = vld [vmem:[%s379_s1] sm:$0xff]  ;;  %v17_v1 = vld [vmem:[%s379_s1 + $0x8] sm:$0xff]  ;;  %v18_v2 = vld [vmem:[%s379_s1 + $0x10] sm:$0xff]  ;;  %269 = vmatprep.subr.bf16.mxu0 %v311_v3  ;;  %261 = vmatprep.mubr.msk.f32.mxu0 %vm312_vm0, %v313_v6 }
   0x2   :  { %v270_v4 = vpack.c.bf16 %v17_v1, %v16_v0  ;;  %v19_v5 = vld [vmem:[%s379_s1 + $0x18] sm:$0xff]  ;;  %v106_v7 = vld [vmem:[%s380_s2] sm:$0xff]  ;;  %282 = vset.pattern.permute.xlu0 %v314_v8  ;;  %264 = vmatprep.subr.mxu1 %v313_v6 }
   0x3   :  { %vm107_vm1 = vcmp.gt.f32.partialorder %v106_v7, 0.5 }
   0x4   :  { %8 = vsyncpa [#allocation3], 0  ;;  %271 = vmatpush3.bf16.msra.mxu0 %v270_v4  ;;  %v273_v9 = vpack.c.bf16 %v19_v5, %v18_v2  ;;  %v108_v10 = vsel %vm107_vm1, 1, %v314_v8  ;;  %266 = vmatprep.mubr.msk.f32.mxu1 %vm312_vm0, %v313_v6  ;;  %v15_v11 = vld [vmem:[%s378_s0] sm:$0xff]  ;;  %vm20_vm2 = vcmask 261120   ;;  %v94_v12 = vlaneseq  ;;  %s315_s2 = smov 124  }
   0x5   :  { %272 = vmatprep.subr.bf16.mxu0 %v311_v3  ;;  %110 = vperm.xlu0 %282, %v108_v10   ;;  %v136_v18 = vld [vmem:[%s379_s1 + $0x20] sm:$0xf]  ;;  %vm143_vm3 = vcmask 1043456   ;;  %vm114_vm5 = vcmask 294144   ;;  %s316_s0 = smov 96   ;;  %vm140_vm7 = vcmask 31744  }
   0x6   :  { %v95_v13 = vshrl.u32 %v94_v12, 7  ;;  %265 = vmatpush3.msk.msra.mxu1 %vm143_vm3, %v136_v18  ;;  %v225_v56 = vld [vmem:[%s379_s1 + $0x28] sm:$0x1]  ;;  %s317_s28 = smov [#allocation2]   ;;  %vm227_vm8 = vcmask 253952  }
   0x7   :  { %s235_s29 = sshll.u32 %s317_s28, 4  ;;  %s236_s29 = int_to_ptr.vmem [resolvable:$true] %s235_s29 }
   0x8   :  { %274 = vmatpush3.bf16.msra.mxu0 %v273_v9  ;;  %v96_v14 = vsub.s32 0, %v95_v13  ;;  %s287_s30 = scalar_lea.vmem %s236_s29, 16  ;;  %s291_s4 = scalar_lea.vmem %s236_s29, 32 }
   0x9   :  { %p288_p0 = scmp.ne.s32.totalorder %s236_s29, %s287_s30  ;;  %p292_p1 = scmp.lt.s32.totalorder %s236_s29, %s236_s29 }
   0xa   :  { %p293_p2 = scmp.lt.s32.totalorder %s291_s4, %s287_s30 }
   0xb   :  { %262 = vmatmul.mubr.msk.f32.vlgmr.msra.gmra.mrb[0].mxu0 %vm20_vm2, %v15_v11 }
   0xc   :  { %p294_p3 = por %p293_p2, %p292_p1 }
   0xe   :  { %p295_p4 = pnand %p294_p3, %p288_p0 }
  0x84   :  { %v111_v19 = vpop.permute.xlu0 %110 }
  0x85   :  { %vm112_vm6 = vcmp.eq.s32.totalorder %v111_v19, 1 }
  0xde   :  { %v90_v15 = vpop.f32.mrb[0].mxu0 }
  0xdf   :  { %v97_v16 = vrot.slane %v90_v15, %v96_v14  ;;  %v263_v17 = vpop.f32.mrb[1].mxu0 }
  0xe1   :  { %99 = vrot.lane.b32.xlu0 %v97_v16, %s315_s2 }
 0x153   :  { %v100_v20 = vpop.permute.xlu0 %99 }
 0x154   :  { %v102_v21 = vadd.f32 %v100_v20, %v90_v15 }
 0x156   :  { %vm103_vm4 = vcmp.gt.f32.partialorder %v102_v21, 0.0  ;;  %v104_v22 = vmul.f32 0.2, %v102_v21 }
 0x158   :  { %v105_v23 = vsel %vm103_vm4, %v102_v21, %v104_v22 }
 0x159   :  { %v113_v24 = vsel %vm112_vm6, %v105_v23, -1e+30 }
 0x15a   :  { %v115_v25 = vsel %vm114_vm5, %v113_v24, -inf }
 0x15b   :  { %v116_v26 = vrot.slane %v115_v25, 4 }
 0x15d   :  { %v117_v27 = vmax.f32 %v115_v25, %v116_v26 }
 0x15f   :  { %v118_v28 = vrot.slane %v117_v27, 2 }
 0x161   :  { %v119_v29 = vmax.f32 %v117_v27, %v118_v28 }
 0x163   :  { %v120_v30 = vrot.slane %v119_v29, 1 }
 0x165   :  { %v121_v31 = vmax.f32 %v119_v29, %v120_v30 }
 0x167   :  { %v122_v32 = vsub.f32 %v113_v24, %v121_v31 }
 0x169   :  { %v123_v33 = vmul.f32 1.442695, %v122_v32 }
 0x16b   :  { %283 = vpow2.f32 %v123_v33 }
 0x175   :  { %v284_v34 = vpop.eup %283 }
 0x176   :  { %v125_v35 = vsel %vm112_vm6, %v284_v34, 0.0 }
 0x177   :  { %v126_v36 = vsel %vm114_vm5, %v125_v35, 0.0 }
 0x178   :  { %v127_v37 = vrot.slane %v126_v36, 4 }
 0x17a   :  { %v128_v38 = vadd.f32 %v127_v37, %v126_v36 }
 0x17c   :  { %v129_v39 = vrot.slane %v128_v38, 2 }
 0x17e   :  { %v130_v40 = vadd.f32 %v129_v39, %v128_v38 }
 0x180   :  { %v131_v41 = vrot.slane %v130_v40, 1 }
 0x182   :  { %v132_v42 = vadd.f32 %v131_v41, %v130_v40 }
 0x184   :  { %v133_v43 = vmax.f32 %v132_v42, 1e-30 }
 0x186   :  { %285 = vrcp.f32 %v133_v43 }
 0x190   :  { %v286_v44 = vpop.eup %285 }
 0x191   :  { %v135_v45 = vmul.f32 %v286_v44, %v125_v35 }
 0x193   :  { %138 = vrot.lane.b32.xlu1 %v135_v45, %s316_s0 }
 0x205   :  { %v139_v46 = vpop.permute.xlu1 %138 }
 0x206   :  { %267 = vmatmul.mubr.msk.f32.vlgmr.msra.gmra.mrb[0].mxu1 %vm140_vm7, %v139_v46 }
 0x2d9   :  { %v213_v47 = vpop.f32.mrb[0].mxu1 }
 0x2da   :  { %v217_v48 = vmul.f32 %v213_v47, %v90_v15  ;;  %v268_v49 = vpop.f32.mrb[1].mxu1 }
 0x2dc   :  { %v218_v50 = vsel %vm20_vm2, %v217_v48, 0.0 }
 0x2dd   :  { %v219_v51 = vrot.slane %v218_v50, 4 }
 0x2df   :  { %v220_v52 = vadd.f32 %v219_v51, %v218_v50 }
 0x2e1   :  { %v221_v53 = vrot.slane %v220_v52, 2 }
 0x2e3   :  { %v222_v54 = vadd.f32 %v221_v53, %v220_v52 }
 0x2e5   :  { %v223_v55 = vrot.slane %v222_v54, 1 }
 0x2e7   :  { %v224_v57 = vadd.f32 %v223_v55, %v222_v54 }
 0x2e9   :  { %v226_v58 = vadd.f32 %v225_v56, %v224_v57 }
 0x2eb   :  { %228 = vst.msk [vmem:[#allocation2] sm:$0x1] %vm227_vm8, %v226_v58 }
 0x2ec   :  { %298 = shalt.err (!%p295_p4)
}
 0x2ed   :  { %s299_s7 = scalar_lea.hbm %s381_s3, 16 }
 0x2ee   :  { %p300_p5 = scmp.ne.s32.totalorder %s381_s3, %s299_s7  ;;  %p303_p6 = scmp.lt.u32.totalorder %s299_s7, %s381_s3 }
 0x2f0   :  { %p305_p7 = pnand %p303_p6, %p300_p5 }
 0x2f2   :  { %308 = shalt.err (!%p305_p7)
}
 0x2f3   :  { %238 = dma.vmem_to_hbm [thread:$0]  %s236_s29, 16, %s381_s3, [#allocation3]  }
 0x2f4   :  { %309 = dma.done.wait [#allocation3], 16  }
 0x2f5   :  { %310 = vsyncadd [#allocation3], 4294967280 }
 0x2f6   :  { %242 = vsyncpa [#allocation3], 1 }

</bundles_post_ra>
